<compile_context>
chip_gen: v5e
topology: v5e:2x2
jax: 0.10.0
libtpu: 0.0.40
codegen_flags: <defaults>
</compile_context>

<pallas_src>
import functools

import jax
import jax.numpy as jnp
from jax.experimental import pallas as pl
from jax.experimental.pallas import tpu as pltpu


def _round_up(x, m):
    return -(-int(x) // m) * m


def _round_down(x, m):
    return (int(x) // m) * m


def _vmem_capacity_bytes():
    # Trace-time HW query; fall back to the smallest per-core VMEM across
    # generations (v7x: 64 MiB), which is a safe budget everywhere.
    try:
        cap = getattr(pltpu.get_tpu_info(), "vmem_capacity_bytes", None)
        if cap:
            return int(cap)
    except Exception:
        pass
    return 64 * 1024 * 1024


def _focal_loss_kernel(logits_ref, targets_ref, alpha_ref, partial_ref, *,
                       gamma, n_total, tile_rows):
    i = pl.program_id(0)

    x = logits_ref[...].astype(jnp.float32)        # (TN, C)
    t = targets_ref[...]                           # (TN, 1) int32
    a = alpha_ref[...].astype(jnp.float32)         # (1, C)
    tn, c = x.shape

    # Ragged last tile: rows past the true batch size hold unspecified data
    # (no host-side pad copy).  Sanitize BEFORE exp so nothing can turn into
    # inf/NaN; jnp.where does not propagate NaN from the unselected branch.
    row_idx = i * tile_rows + jax.lax.broadcasted_iota(jnp.int32, (tn, 1), 0)
    row_valid = row_idx < n_total                                  # (TN, 1)
    x = jnp.where(row_valid, x, 0.0)

    # Fused one-hot (replaces torch scatter_): select-then-reduce, no mask temp.
    cls_idx = jax.lax.broadcasted_iota(jnp.int32, (tn, c), 1)
    is_t = cls_idx == t                                            # (TN, C)

    # log-softmax formulation (numerically safe, no divide, no log(0)).
    m = jnp.max(x, axis=-1, keepdims=True)                         # (TN, 1)
    lse = m + jnp.log(jnp.sum(jnp.exp(x - m), axis=-1, keepdims=True))
    x_t = jnp.sum(jnp.where(is_t, x, 0.0), axis=-1, keepdims=True)       # target logit
    alpha_s = jnp.sum(jnp.where(is_t, a, 0.0), axis=-1, keepdims=True)   # per-sample alpha
    log_p = x_t - lse                                              # (TN, 1), <= 0
    probs = jnp.exp(log_p)                                         # (TN, 1), in (0, 1]

    # (1 - p)^gamma: repeated VPU multiply for integer gamma (no EUP pow).
    q = jnp.maximum(1.0 - probs, 0.0)
    gamma_f = float(gamma)
    if gamma_f == int(gamma_f) and gamma_f >= 0:
        w = jnp.ones_like(q)
        for _ in range(int(gamma_f)):
            w = w * q
    else:
        w = jnp.power(q, jnp.float32(gamma_f))

    per_row = jnp.where(row_valid, -alpha_s * w * log_p, 0.0)      # (TN, 1)
    tile_sum = jnp.sum(per_row)

    # Lane-dense (1, 1, 128) partial-sum block; reduced outside the kernel.
    partial_ref[...] = jnp.full(partial_ref.shape, tile_sum, dtype=jnp.float32)


def focal_loss(logits, targets, alpha=None, gamma=2, size_average=True,
               tile_rows=None):
    """logits: (N, C) float; targets: (N,) int; alpha: (C,) float or None."""
    n, c = logits.shape
    dtype = logits.dtype

    if alpha is None:
        alpha = jnp.ones((c,), dtype=jnp.float32)
    alpha_row = jnp.asarray(alpha, dtype=jnp.float32).reshape(1, c)
    targets_col = jnp.asarray(targets, dtype=jnp.int32).reshape(n, 1)

    # ---- tile sizing from a VMEM budget -------------------------------------
    row_align = 16 if dtype == jnp.bfloat16 else 8
    dtype_bytes = jnp.dtype(dtype).itemsize
    c_lanes = _round_up(c, 128)
    # per-row VMEM cost, double-buffered: logits row + lane-padded (tn,1) targets
    per_row_vmem = 2 * (c_lanes * dtype_bytes + 128 * 4)

    vmem_cap = _vmem_capacity_bytes()
    block_budget = (vmem_cap * 11) // 20                 # ~55% for the blocks
    vmem_limit = min((vmem_cap * 3) // 4, 128 * 1024 * 1024)

    tn_full_n = _round_up(n, row_align)                  # whole batch in one tile
    if tile_rows is None:
        tn = max(row_align, _round_down(block_budget // per_row_vmem, row_align))
        if n >= 4 * row_align:
            # keep >= ~4 tiles so the "parallel" axis feeds both v7x TCs
            tn = min(tn, max(row_align, _round_down(n // 4, row_align)))
        tn = min(tn, tn_full_n)
    else:
        tn = max(row_align, _round_up(tile_rows, row_align))
    tn = int(tn)

    n_tiles = pl.cdiv(n, tn)                             # ragged last tile OK

    kernel = functools.partial(_focal_loss_kernel, gamma=gamma,
                               n_total=n, tile_rows=tn)

    cost = pl.CostEstimate(
        flops=8 * n * c,
        transcendentals=n * (c + 2),                     # exp over (N,C) + log/exp per row
        bytes_accessed=(n * c * dtype_bytes              # logits read
                        + n * 4                          # targets read
                        + c * 4                          # alpha read
                        + n_tiles * 128 * 4),            # partials write
    )

    partials = pl.pallas_call(
        kernel,
        out_shape=jax.ShapeDtypeStruct((n_tiles, 1, 128), jnp.float32),
        grid=(n_tiles,),
        in_specs=[
            pl.BlockSpec((tn, c), lambda i: (i, 0)),     # logits tile
            pl.BlockSpec((tn, 1), lambda i: (i, 0)),     # targets tile
            pl.BlockSpec((1, c), lambda i: (0, 0)),      # alpha (broadcast)
        ],
        out_specs=pl.BlockSpec((1, 1, 128), lambda i: (i, 0, 0)),
        compiler_params=pltpu.CompilerParams(
            dimension_semantics=("parallel",),           # megacore on v7x
            vmem_limit_bytes=int(vmem_limit),
        ),
        cost_estimate=cost,
    )(logits, targets_col, alpha_row)

    total = jnp.sum(partials[:, 0, 0])
    if size_average:
        total = total / jnp.float32(n)                   # global N, not tile
    return total


def _reference(logits, targets, alpha, gamma, size_average):
    logits = logits.astype(jnp.float32)
    log_p_full = jax.nn.log_softmax(logits, axis=-1)
    log_p = jnp.take_along_axis(log_p_full, targets[:, None], axis=1)
    probs = jnp.exp(log_p)
    a = alpha[targets][:, None]
    per_row = -a * (1.0 - probs) ** gamma * log_p
    return jnp.mean(per_row) if size_average else jnp.sum(per_row)


if __name__ == "__main__":
    key = jax.random.PRNGKey(0)
    k1, k2, k3, k4, k5, k6 = jax.random.split(key, 6)

    # case 1: small, single tile
    N, C = 8, 16
    logits = jax.random.normal(k1, (N, C), dtype=jnp.float32)
    targets = jax.random.randint(k2, (N,), 0, C, dtype=jnp.int32)
    alpha = jnp.ones((C,), dtype=jnp.float32)

    loss = focal_loss(logits, targets, alpha=None, gamma=2, size_average=True)
    loss = jax.block_until_ready(loss)
    ref = _reference(logits, targets, alpha, 2, True)
    assert jnp.allclose(loss, ref, atol=1e-5, rtol=1e-5), (loss, ref)

    # case 2: ragged batch, multiple tiles, forced small tile (padding mask + grid)
    N2, C2 = 20, 16
    logits2 = jax.random.normal(k3, (N2, C2), dtype=jnp.float32)
    targets2 = jax.random.randint(k4, (N2,), 0, C2, dtype=jnp.int32)
    alpha2 = jnp.linspace(0.5, 1.5, C2, dtype=jnp.float32)

    loss2 = focal_loss(logits2, targets2, alpha=alpha2, gamma=2,
                       size_average=True, tile_rows=8)
    loss2 = jax.block_until_ready(loss2)
    ref2 = _reference(logits2, targets2, alpha2, 2, True)
    assert jnp.allclose(loss2, ref2, atol=1e-5, rtol=1e-5), (loss2, ref2)

    # case 3: automatic tile sizing, ragged last tile, non-128 class count,
    #         gamma=3, sum reduction
    N3, C3 = 300, 20
    logits3 = jax.random.normal(k5, (N3, C3), dtype=jnp.float32)
    targets3 = jax.random.randint(k6, (N3,), 0, C3, dtype=jnp.int32)
    alpha3 = jnp.linspace(0.25, 2.0, C3, dtype=jnp.float32)

    loss3 = focal_loss(logits3, targets3, alpha=alpha3, gamma=3,
                       size_average=False)
    loss3 = jax.block_until_ready(loss3)
    ref3 = _reference(logits3, targets3, alpha3, 3, False)
    assert jnp.allclose(loss3, ref3, atol=1e-4, rtol=1e-5), (loss3, ref3)

    print("KERNEL_OK")
</pallas_src>

<mosaic_0001>
module attributes {stable_mosaic.version = 11 : i64} {
  func.func @_focal_loss_kernel(%arg0: i32, %arg1: memref<8x16xf32, #tpu.memory_space<vmem>>, %arg2: memref<8x1xi32, #tpu.memory_space<vmem>>, %arg3: memref<1x16xf32, #tpu.memory_space<vmem>>, %arg4: memref<1x1x128xf32, #tpu.memory_space<vmem>>) attributes {dimension_semantics = [#tpu.dimension_semantics<parallel>], iteration_bounds = array<i64: 1>, scalar_prefetch = 0 : i64, scratch_operands = 0 : i64, tpu.core_type = #tpu.core_type<tc>, window_params = [{transform_indices = @transform_0, window_bounds = array<i64: 8, 16>}, {transform_indices = @transform_1, window_bounds = array<i64: 8, 1>}, {pipeline_mode = #tpu.pipeline_mode<synchronous>, transform_indices = @transform_2, window_bounds = array<i64: 1, 16>}, {transform_indices = @transform_3, window_bounds = array<i64: 1, 1, 128>}]} {
    %c0 = arith.constant 0 : index
    %c0_0 = arith.constant 0 : index
    %0 = vector.load %arg1[%c0, %c0_0] : memref<8x16xf32, #tpu.memory_space<vmem>>, vector<8x16xf32>
    %c0_1 = arith.constant 0 : index
    %c0_2 = arith.constant 0 : index
    %1 = vector.load %arg2[%c0_1, %c0_2] : memref<8x1xi32, #tpu.memory_space<vmem>>, vector<8x1xi32>
    %c0_3 = arith.constant 0 : index
    %c0_4 = arith.constant 0 : index
    %2 = vector.load %arg3[%c0_3, %c0_4] : memref<1x16xf32, #tpu.memory_space<vmem>>, vector<1x16xf32>
    %c8_i32 = arith.constant 8 : i32
    %3 = arith.muli %arg0, %c8_i32 : i32
    %4 = tpu.iota {dimensions = array<i32: 0>} : vector<8x1xi32>
    %5 = vector.broadcast %3 : i32 to vector<8x1xi32>
    %6 = arith.addi %5, %4 : vector<8x1xi32>
    %c8_i32_5 = arith.constant 8 : i32
    %7 = vector.broadcast %c8_i32_5 : i32 to vector<8x1xi32>
    %8 = arith.cmpi slt, %6, %7 : vector<8x1xi32>
    %cst = arith.constant 0.000000e+00 : f32
    %9 = vector.shape_cast %8 : vector<8x1xi1> to vector<8x1xi1>
    %10 = vector.broadcast %9 : vector<8x1xi1> to vector<8x16xi1>
    %11 = vector.broadcast %cst : f32 to vector<8x16xf32>
    %12 = arith.select %10, %0, %11 : vector<8x16xi1>, vector<8x16xf32>
    %13 = tpu.iota {dimensions = array<i32: 1>} : vector<8x16xi32>
    %14 = vector.broadcast %1 : vector<8x1xi32> to vector<8x16xi32>
    %15 = arith.cmpi eq, %13, %14 : vector<8x16xi32>
    %cst_6 = arith.constant dense<0xFF800000> : vector<8xf32>
    %16 = vector.multi_reduction <maximumf>, %12, %cst_6 [1] : vector<8x16xf32> to vector<8xf32>
    %17 = vector.shape_cast %16 : vector<8xf32> to vector<8x1xf32>
    %18 = vector.broadcast %17 : vector<8x1xf32> to vector<8x16xf32>
    %19 = arith.subf %12, %18 : vector<8x16xf32>
    %20 = math.exp %19 : vector<8x16xf32>
    %cst_7 = arith.constant dense<0.000000e+00> : vector<8xf32>
    %21 = vector.multi_reduction <add>, %20, %cst_7 [1] : vector<8x16xf32> to vector<8xf32>
    %22 = vector.shape_cast %21 : vector<8xf32> to vector<8x1xf32>
    %23 = math.log %22 : vector<8x1xf32>
    %24 = arith.addf %17, %23 : vector<8x1xf32>
    %cst_8 = arith.constant 0.000000e+00 : f32
    %25 = vector.broadcast %cst_8 : f32 to vector<8x16xf32>
    %26 = arith.select %15, %12, %25 : vector<8x16xi1>, vector<8x16xf32>
    %cst_9 = arith.constant dense<0.000000e+00> : vector<8xf32>
    %27 = vector.multi_reduction <add>, %26, %cst_9 [1] : vector<8x16xf32> to vector<8xf32>
    %28 = vector.shape_cast %27 : vector<8xf32> to vector<8x1xf32>
    %cst_10 = arith.constant 0.000000e+00 : f32
    %29 = vector.shape_cast %2 : vector<1x16xf32> to vector<1x16xf32>
    %30 = vector.broadcast %29 : vector<1x16xf32> to vector<8x16xf32>
    %31 = vector.broadcast %cst_10 : f32 to vector<8x16xf32>
    %32 = arith.select %15, %30, %31 : vector<8x16xi1>, vector<8x16xf32>
    %cst_11 = arith.constant dense<0.000000e+00> : vector<8xf32>
    %33 = vector.multi_reduction <add>, %32, %cst_11 [1] : vector<8x16xf32> to vector<8xf32>
    %34 = vector.shape_cast %33 : vector<8xf32> to vector<8x1xf32>
    %35 = arith.subf %28, %24 : vector<8x1xf32>
    %36 = math.exp %35 : vector<8x1xf32>
    %cst_12 = arith.constant 1.000000e+00 : f32
    %37 = vector.broadcast %cst_12 : f32 to vector<8x1xf32>
    %38 = arith.subf %37, %36 : vector<8x1xf32>
    %cst_13 = arith.constant 0.000000e+00 : f32
    %39 = vector.broadcast %cst_13 : f32 to vector<8x1xf32>
    %40 = arith.maximumf %38, %39 : vector<8x1xf32>
    %cst_14 = arith.constant 1.000000e+00 : f32
    %41 = vector.broadcast %cst_14 : f32 to vector<8x1xf32>
    %42 = arith.mulf %41, %40 : vector<8x1xf32>
    %43 = arith.mulf %42, %40 : vector<8x1xf32>
    %cst_15 = arith.constant 0.000000e+00 : f32
    %44 = vector.broadcast %cst_15 : f32 to vector<8x1xf32>
    %45 = arith.subf %44, %34 : vector<8x1xf32>
    %46 = arith.mulf %45, %43 : vector<8x1xf32>
    %47 = arith.mulf %46, %35 : vector<8x1xf32>
    %cst_16 = arith.constant 0.000000e+00 : f32
    %48 = vector.broadcast %cst_16 : f32 to vector<8x1xf32>
    %49 = arith.select %8, %47, %48 : vector<8x1xi1>, vector<8x1xf32>
    %50 = vector.shape_cast %49 : vector<8x1xf32> to vector<1x8x1xf32>
    %cst_17 = arith.constant dense<0.000000e+00> : vector<1xf32>
    %51 = vector.multi_reduction <add>, %50, %cst_17 [1, 2] : vector<1x8x1xf32> to vector<1xf32>
    %52 = vector.shape_cast %51 : vector<1xf32> to vector<1x1x1xf32>
    %53 = vector.extract %52[0, 0, 0] : f32 from vector<1x1x1xf32>
    %54 = vector.broadcast %53 : f32 to vector<1x1x128xf32>
    %c0_18 = arith.constant 0 : index
    %c0_19 = arith.constant 0 : index
    %c0_20 = arith.constant 0 : index
    %55 = vector.load %arg4[%c0_18, %c0_19, %c0_20] : memref<1x1x128xf32, #tpu.memory_space<vmem>>, vector<1x1x128xf32>
    tpu.vector_store %arg4[%c0_18, %c0_19, %c0_20], %54 {strides = array<i32>} : memref<1x1x128xf32, #tpu.memory_space<vmem>>, vector<1x1x128xf32>,
    return
  }
  func.func @transform_0(%arg0: i32) -> (i32, i32) {
    %c0_i32 = arith.constant 0 : i32
    %c0_i32_0 = arith.constant 0 : i32
    return %arg0, %c0_i32 : i32, i32
  }
  func.func @transform_1(%arg0: i32) -> (i32, i32) {
    %c0_i32 = arith.constant 0 : i32
    %c0_i32_0 = arith.constant 0 : i32
    return %arg0, %c0_i32 : i32, i32
  }
  func.func @transform_2(%arg0: i32) -> (i32, i32) {
    %c0_i32 = arith.constant 0 : i32
    %c0_i32_0 = arith.constant 0 : i32
    %c0_i32_1 = arith.constant 0 : i32
    return %c0_i32, %c0_i32_0 : i32, i32
  }
  func.func @transform_3(%arg0: i32) -> (i32, i32, i32) {
    %c0_i32 = arith.constant 0 : i32
    %c0_i32_0 = arith.constant 0 : i32
    %c0_i32_1 = arith.constant 0 : i32
    return %arg0, %c0_i32, %c0_i32_0 : i32, i32, i32
  }
}

</mosaic_0001>

<bundles_post_ra>
// kernel: tpu_custom_call.1
= control target key start
LH: loop header
LB: loop body
LE: loop exit
PB: predicated region body
PF: predicated region fallthrough
CT: control target
= control target key end

     0   :  { %vm33_vm0 = vcmask 130048   ;;  %v134_v2 = vmov 0   ;;  %s172_s0 = inlined_call_operand.vmem [shape: f32[8,16], index: 0, kind: input, shape index: {}]   ;;  %s173_s1 = inlined_call_operand.vmem [shape: s32[8,1], index: 1, kind: input, shape index: {}]   ;;  %s174_s2 = inlined_call_operand.vmem [shape: f32[1,16], index: 2, kind: input, shape index: {}]   ;;  %s175_s3 = inlined_call_operand.hbm [shape: f32[1,1,128], index: 3, kind: output, shape index: {}]  }
   0x1   :  { %v15_v0 = vld [vmem:[%s172_s0] sm:$0xff]  ;;  %100 = vset.pattern.permute.xlu0 %v134_v2 }
   0x2   :  { %v34_v1 = vsel %vm33_vm0, %v15_v0, -inf }
   0x3   :  { %8 = vsyncpa [#allocation3], 0  ;;  %35 = vmax.xlane.f32.xlu0 %v34_v1  ;;  %v16_v3 = vld [vmem:[%s173_s1] sm:$0xff]  ;;  %v27_v9 = vlaneseq  ;;  %vm67_vm2 = vcmask 7168   ;;  %s135_s1 = smov [#allocation2]   ;;  %s87_s19 = sshll.u32 %s175_s3, 4  ;;  %s88_s19 = int_to_ptr.hbm [resolvable:$true] %s87_s19 }
   0x4   :  { %v101_v11 = vld [vmem:[%s174_s2] ss:$0 sm:$0xff]  ;;  %s85_s2 = sshll.u32 %s135_s1, 4  ;;  %s86_s2 = int_to_ptr.vmem [resolvable:$true] %s85_s2 }
   0x5   :  { %v28_v10 = vand.u32 127, %v27_v9 }
  0x17   :  { %30 = vperm.xlu0 %100, %v16_v3  }
  0x76   :  { %v36_v4 = vpop.xlane.xlu0 %35 }
  0x77   :  { %v37_v5 = vsub.f32 %v15_v0, %v36_v4 }
  0x79   :  { %v38_v6 = vmul.f32 1.442695, %v37_v5 }
  0x7b   :  { %102 = vpow2.f32 %v38_v6 }
  0x81   :  { %v103_v7 = vpop.eup %102 }
  0x82   :  { %v40_v8 = vsel %vm33_vm0, %v103_v7, 0.0 }
  0x83   :  { %41 = vadd.xlane.f32.xlu1 %v40_v8 }
  0x89   :  { %v31_v12 = vpop.permute.xlu0 %30 }
  0x8a   :  { %vm32_vm1 = vcmp.eq.s32.totalorder %v28_v10, %v31_v12 }
  0x8b   :  { %v53_v13 = vsel %vm32_vm1, %v101_v11, 0.0  ;;  %v46_v14 = vsel %vm32_vm1, %v15_v0, 0.0 }
  0x8c   :  { %v54_v15 = vsel %vm33_vm0, %v53_v13, 0.0  ;;  %v47_v16 = vsel %vm33_vm0, %v46_v14, 0.0 }
  0x8d   :  { %55 = vadd.xlane.f32.xlu2 %v54_v15  ;;  %48 = vadd.xlane.f32.xlu1 %v47_v16 }
  0xf6   :  { %v42_v17 = vpop.xlane.xlu1 %41 }
  0xf7   :  { %104 = vlog2.f32 %v42_v17 }
  0xfd   :  { %v105_v18 = vpop.eup %104 }
  0xfe   :  { %v44_v19 = vmul.f32 0.6931472, %v105_v18 }
 0x100   :  { %v45_v20 = vadd.f32 %v44_v19, %v36_v4  ;;  %v49_v21 = vpop.xlane.xlu1 %48  ;;  %v56_v26 = vpop.xlane.xlu2 %55 }
 0x101   :  { %v63_v28 = vsub.f32 0.0, %v56_v26 }
 0x102   :  { %v57_v22 = vsub.f32 %v49_v21, %v45_v20 }
 0x104   :  { %v58_v23 = vmul.f32 1.442695, %v57_v22 }
 0x106   :  { %106 = vpow2.f32 %v58_v23 }
 0x10c   :  { %v107_v24 = vpop.eup %106 }
 0x10d   :  { %v60_v25 = vsub.f32 1.0, %v107_v24 }
 0x10f   :  { %v61_v27 = vmax.f32 %v60_v25, 0.0 }
 0x111   :  { %v62_v29 = vmul.f32 %v61_v27, %v61_v27 }
 0x113   :  { %v64_v30 = vmul.f32 %v63_v28, %v62_v29 }
 0x115   :  { %v65_v31 = vmul.f32 %v64_v30, %v57_v22 }
 0x117   :  { %v68_v32 = vsel %vm67_vm2, %v65_v31, 0.0 }
 0x118   :  { %69 = vadd.xlane.f32.xlu2 %v68_v32 }
 0x18b   :  { %v70_v33 = vpop.xlane.xlu2 %69 }
 0x18c   :  { %v71_v34 = vrot.slane %v70_v33, 4 }
 0x18e   :  { %v72_v35 = vadd.f32 %v71_v34, %v70_v33 }
 0x190   :  { %v73_v36 = vrot.slane %v72_v35, 2 }
 0x192   :  { %v74_v37 = vadd.f32 %v73_v36, %v72_v35 }
 0x194   :  { %v75_v38 = vrot.slane %v74_v37, 1 }
 0x196   :  { %v76_v39 = vadd.f32 %v75_v38, %v74_v37 }
 0x198   :  { %96 = vpush %v76_v39 }
 0x1c9   :  { %s97_s20 = spop %96 }
 0x1ca   :  { %v78_v40 = vstv %s97_s20 }
 0x1cb   :  { %79 = vst [vmem:[#allocation2] sm:$0x1] %v78_v40 }
 0x1cc   :  { %90 = dma.vmem_to_hbm [thread:$0]  %s86_s2, 16, %s88_s19, [#allocation3]  }
 0x1cd   :  { %132 = dma.done.wait [#allocation3], 16  }
 0x1ce   :  { %133 = vsyncadd [#allocation3], 4294967280 }
 0x1cf   :  { %95 = vsyncpa [#allocation3], 1 }

</bundles_post_ra>
